<compile_context>
chip_gen: v6e
topology: v6e:2x2x1
jax: 0.10.0
libtpu: 0.0.40
codegen_flags: <defaults>
</compile_context>

<pallas_src>
import jax
import jax.numpy as jnp
from jax.experimental import pallas as pl
from jax.experimental.pallas import tpu as pltpu


def _inv_res_kernel(x_ref, w_ref, vec_ref, o_ref):
    # x_ref: (Cin, T)   w_ref: (Cexp, Cin)   vec_ref: (Cexp, 3)   o_ref: (Cexp, T)
    y = jnp.dot(w_ref[...], x_ref[...], preferred_element_type=jnp.float32)  # (Cexp, T)
    b1 = vec_ref[:, 0:1]          # folded BN1 shift (BN1 scale already folded into w_ref)
    ws2 = vec_ref[:, 1:2]         # depthwise weight * BN2 scale
    b2 = vec_ref[:, 2:3]          # folded BN2 shift
    y = jnp.maximum(y + b1, 0.0)                              # BN1 + ReLU
    o_ref[...] = (y * ws2 + b2).astype(o_ref.dtype)           # dw 1x1 conv + BN2


def _pick_hw_tile(HW, Cin, Cexp, max_tile=2048, vmem_budget_bytes=8 << 20):
    """Lane tile: full HW if small, else the largest multiple of 128 fitting the budget."""
    if HW <= max_tile:
        return HW                                   # equals full array dim -> always legal
    # double-buffered x + out blocks (f32) must fit comfortably in scoped VMEM
    bytes_per_lane = 2 * (Cin + Cexp) * 4
    t = min(max_tile, vmem_budget_bytes // max(bytes_per_lane, 1))
    t = max(128, (t // 128) * 128)
    return t


def inverted_residual_pallas(x_nchw, params, *, max_tile_hw=2048):
    """x_nchw: (N, Cin, H, W) float32. Returns (N, Cexp, H, W)."""
    (w1, g1, beta1, mean1, var1, w2, g2, beta2, mean2, var2, eps) = params
    N, Cin, H, W = x_nchw.shape
    Cexp = w1.shape[0]
    HW = H * W

    # Fold BatchNorm (inference) into per-channel scale/shift; fold BN1 scale into W1.
    s1 = g1 / jnp.sqrt(var1 + eps)                      # (Cexp,)
    b1 = beta1 - mean1 * s1                             # (Cexp,)
    s2 = g2 / jnp.sqrt(var2 + eps)                      # (Cexp,)
    b2 = beta2 - mean2 * s2                             # (Cexp,)
    ws2 = w2.reshape(Cexp) * s2                         # (Cexp,)
    w1s = w1.reshape(Cexp, Cin) * s1[:, None]           # (Cexp, Cin), BN1 scale folded in
    vec = jnp.stack([b1, ws2, b2], axis=1)              # (Cexp, 3) packed per-channel vectors

    # Channel-major view (free reshape, no transpose): (N, Cin, HW)
    x_v = x_nchw.reshape(N, Cin, HW)

    t = _pick_hw_tile(HW, Cin, Cexp, max_tile=max_tile_hw)
    n_hw = pl.cdiv(HW, t)

    out_v = pl.pallas_call(
        _inv_res_kernel,
        out_shape=jax.ShapeDtypeStruct((N, Cexp, HW), x_nchw.dtype),
        grid_spec=pltpu.PrefetchScalarGridSpec(
            num_scalar_prefetch=0,
            grid=(N, n_hw),
            in_specs=[
                pl.BlockSpec((None, Cin, t), lambda n, j: (n, 0, j)),   # batch dim squeezed
                pl.BlockSpec((Cexp, Cin), lambda n, j: (0, 0)),         # folded weight (resident)
                pl.BlockSpec((Cexp, 3), lambda n, j: (0, 0)),           # packed b1/ws2/b2 (resident)
            ],
            out_specs=pl.BlockSpec((None, Cexp, t), lambda n, j: (n, 0, j)),
        ),
        compiler_params=pltpu.CompilerParams(
            dimension_semantics=("parallel", "parallel")),
    )(x_v, w1s, vec)

    # Free reshape back to NCHW.
    return out_v.reshape(N, Cexp, H, W)


def make_params(key, in_ch, exp_ch, eps=1e-5):
    """Deterministic synthetic parameters matching the PyTorch module's shapes."""
    ks = jax.random.split(key, 8)
    w1 = jax.random.normal(ks[0], (exp_ch, in_ch, 1, 1), jnp.float32) * 0.1   # conv1 weight
    g1 = 1.0 + 0.1 * jax.random.normal(ks[1], (exp_ch,), jnp.float32)         # BN1 gamma
    beta1 = 0.1 * jax.random.normal(ks[2], (exp_ch,), jnp.float32)            # BN1 beta
    mean1 = 0.05 * jax.random.normal(ks[3], (exp_ch,), jnp.float32)           # BN1 running_mean
    var1 = 1.0 + 0.1 * jax.nn.softplus(jax.random.normal(ks[4], (exp_ch,)))   # BN1 running_var
    w2 = jax.random.normal(ks[5], (exp_ch, 1, 1, 1), jnp.float32) * 0.5       # depthwise conv weight
    g2 = 1.0 + 0.1 * jax.random.normal(ks[6], (exp_ch,), jnp.float32)         # BN2 gamma
    beta2 = 0.1 * jax.random.normal(ks[7], (exp_ch,), jnp.float32)            # BN2 beta
    mean2 = jnp.linspace(-0.05, 0.05, exp_ch, dtype=jnp.float32)              # BN2 running_mean
    var2 = jnp.linspace(0.9, 1.1, exp_ch, dtype=jnp.float32)                  # BN2 running_var
    return (w1.reshape(exp_ch, in_ch), g1, beta1, mean1, var1,
            w2, g2, beta2, mean2, var2, jnp.float32(eps))


def reference_jax(x_nchw, params):
    (w1, g1, beta1, mean1, var1, w2, g2, beta2, mean2, var2, eps) = params
    N, Cin, H, W = x_nchw.shape
    Cexp = w1.shape[0]
    x = jnp.transpose(x_nchw, (0, 2, 3, 1))                     # NHWC
    y = jnp.einsum("nhwc,oc->nhwo", x, w1.reshape(Cexp, Cin))   # 1x1 conv
    y = g1 * (y - mean1) / jnp.sqrt(var1 + eps) + beta1
    y = jnp.maximum(y, 0.0)
    z = y * w2.reshape(Cexp)                                    # depthwise 1x1 conv
    z = g2 * (z - mean2) / jnp.sqrt(var2 + eps) + beta2
    return jnp.transpose(z, (0, 3, 1, 2))


if __name__ == "__main__":
    key = jax.random.PRNGKey(0)
    kx, kp = jax.random.split(key)
    N, Cin, H, W = 2, 4, 16, 16
    Cexp = 8
    x = jax.random.normal(kx, (N, Cin, H, W), jnp.float32)
    params = make_params(kp, Cin, Cexp)

    out = inverted_residual_pallas(x, params)
    out = jax.block_until_ready(out)

    ref = reference_jax(x, params)
    assert out.shape == (N, Cexp, H, W)
    assert jnp.allclose(out, ref, atol=1e-4, rtol=1e-4)
    print("KERNEL_OK")
</pallas_src>

<mosaic_0001>
module attributes {stable_mosaic.version = 11 : i64} {
  func.func @_inv_res_kernel(%arg0: i32, %arg1: i32, %arg2: memref<1x4x256xf32, #tpu.memory_space<vmem>>, %arg3: memref<8x4xf32, #tpu.memory_space<vmem>>, %arg4: memref<8x3xf32, #tpu.memory_space<vmem>>, %arg5: memref<1x8x256xf32, #tpu.memory_space<vmem>>) attributes {dimension_semantics = [#tpu.dimension_semantics<parallel>, #tpu.dimension_semantics<parallel>], iteration_bounds = array<i64: 2, 1>, scalar_prefetch = 0 : i64, scratch_operands = 0 : i64, tpu.core_type = #tpu.core_type<tc>, window_params = [{transform_indices = @transform_0, window_bounds = array<i64: 1, 4, 256>}, {pipeline_mode = #tpu.pipeline_mode<synchronous>, transform_indices = @transform_1, window_bounds = array<i64: 8, 4>}, {pipeline_mode = #tpu.pipeline_mode<synchronous>, transform_indices = @transform_2, window_bounds = array<i64: 8, 3>}, {transform_indices = @transform_3, window_bounds = array<i64: 1, 8, 256>}]} {
    %c0 = arith.constant 0 : index
    %c0_0 = arith.constant 0 : index
    %0 = vector.load %arg3[%c0, %c0_0] : memref<8x4xf32, #tpu.memory_space<vmem>>, vector<8x4xf32>
    %c0_1 = arith.constant 0 : index
    %c0_2 = arith.constant 0 : index
    %c0_3 = arith.constant 0 : index
    %1 = vector.load %arg2[%c0_1, %c0_2, %c0_3] : memref<1x4x256xf32, #tpu.memory_space<vmem>>, vector<1x4x256xf32>
    %2 = vector.shape_cast %1 : vector<1x4x256xf32> to vector<4x256xf32>
    %cst = arith.constant dense<0.000000e+00> : vector<8x256xf32>
    %3 = tpu.matmul %0, %2, %cst {dimension_numbers = #tpu.dot_dimension_numbers<[1], [0], [0], [1], [0, 0, 1, 1], [], []>} : vector<8x4xf32>, vector<4x256xf32>, vector<8x256xf32> -> vector<8x256xf32>
    %c0_4 = arith.constant 0 : index
    %c0_5 = arith.constant 0 : index
    %4 = vector.load %arg4[%c0_4, %c0_5] : memref<8x3xf32, #tpu.memory_space<vmem>>, vector<8x1xf32>
    %c0_6 = arith.constant 0 : index
    %c1 = arith.constant 1 : index
    %5 = vector.load %arg4[%c0_6, %c1] : memref<8x3xf32, #tpu.memory_space<vmem>>, vector<8x1xf32>
    %c0_7 = arith.constant 0 : index
    %c2 = arith.constant 2 : index
    %6 = vector.load %arg4[%c0_7, %c2] : memref<8x3xf32, #tpu.memory_space<vmem>>, vector<8x1xf32>
    %7 = vector.broadcast %4 : vector<8x1xf32> to vector<8x256xf32>
    %8 = arith.addf %3, %7 : vector<8x256xf32>
    %cst_8 = arith.constant 0.000000e+00 : f32
    %9 = vector.broadcast %cst_8 : f32 to vector<8x256xf32>
    %10 = arith.maximumf %8, %9 : vector<8x256xf32>
    %11 = vector.broadcast %5 : vector<8x1xf32> to vector<8x256xf32>
    %12 = arith.mulf %10, %11 : vector<8x256xf32>
    %13 = vector.broadcast %6 : vector<8x1xf32> to vector<8x256xf32>
    %14 = arith.addf %12, %13 : vector<8x256xf32>
    %c0_9 = arith.constant 0 : index
    %c0_10 = arith.constant 0 : index
    %c0_11 = arith.constant 0 : index
    %15 = vector.load %arg5[%c0_9, %c0_10, %c0_11] : memref<1x8x256xf32, #tpu.memory_space<vmem>>, vector<1x8x256xf32>
    %16 = vector.shape_cast %15 : vector<1x8x256xf32> to vector<8x256xf32>
    %17 = vector.shape_cast %14 : vector<8x256xf32> to vector<1x8x256xf32>
    tpu.vector_store %arg5[%c0_9, %c0_10, %c0_11], %17 {strides = array<i32>} : memref<1x8x256xf32, #tpu.memory_space<vmem>>, vector<1x8x256xf32>,
    return
  }
  func.func @transform_0(%arg0: i32, %arg1: i32) -> (i32, i32, i32) {
    %c0_i32 = arith.constant 0 : i32
    %c0_i32_0 = arith.constant 0 : i32
    return %arg0, %c0_i32, %arg1 : i32, i32, i32
  }
  func.func @transform_1(%arg0: i32, %arg1: i32) -> (i32, i32) {
    %c0_i32 = arith.constant 0 : i32
    %c0_i32_0 = arith.constant 0 : i32
    %c0_i32_1 = arith.constant 0 : i32
    return %c0_i32, %c0_i32_0 : i32, i32
  }
  func.func @transform_2(%arg0: i32, %arg1: i32) -> (i32, i32) {
    %c0_i32 = arith.constant 0 : i32
    %c0_i32_0 = arith.constant 0 : i32
    %c0_i32_1 = arith.constant 0 : i32
    return %c0_i32, %c0_i32_0 : i32, i32
  }
  func.func @transform_3(%arg0: i32, %arg1: i32) -> (i32, i32, i32) {
    %c0_i32 = arith.constant 0 : i32
    %c0_i32_0 = arith.constant 0 : i32
    return %arg0, %c0_i32, %arg1 : i32, i32, i32
  }
}

</mosaic_0001>

<bundles_post_ra>
// kernel: tpu_custom_call.1
= control target key start
LH: loop header
LB: loop body
LE: loop exit
PB: predicated region body
PF: predicated region fallthrough
CT: control target
= control target key end

     0   :  { %8 = vsyncpa [#allocation3], 0  ;;  %s689_s0 = inlined_call_operand.vmem [shape: f32[2,4,256], index: 0, kind: input, shape index: {}]   ;;  %s690_s1 = inlined_call_operand.vmem [shape: f32[8,4], index: 1, kind: input, shape index: {}]   ;;  %s691_s2 = inlined_call_operand.vmem [shape: f32[8,3], index: 2, kind: input, shape index: {}]   ;;  %s692_s3 = inlined_call_operand.hbm [shape: f32[2,8,256], index: 3, kind: output, shape index: {}]  }
   0x1   :  { %10 = vsyncpa [#allocation3 + $0x1], 0  ;;  %s584_s12 = smov 0   ;;  %s586_s13 = smov 0  }
   0x2   :  { %s588_s14 = smov 0   ;;  %s590_s15 = smov 0  }
   0x3   :  { %s592_s16 = smov 0   ;;  %s594_s17 = smov 0  }
   0x4 LB: > { %s399_s18 = sadd.s32 4294967295, %s557_s17   ;;  %s400_s19 = sadd.s32 4294967294, %s557_s17   ;;  %s557_s17 = sphi %s594_s17, %s16_s17   ;;  %s553_s16 = sphi %s592_s16, %s699_s16   ;;  %s549_s15 = sphi %s590_s15, %s698_s15   ;;  %s545_s14 = sphi %s588_s14, %s697_s14   ;;  %s541_s13 = sphi %s586_s13, %s696_s13   ;;  %s537_s12 = sphi %s584_s12, %s695_s12  }
   0x5   : > { %s28_s20 = sadd.s32 1, %s553_s16  ;;  %s107_s21 = sadd.s32 1, %s545_s14 }
   0x6   : > { %p30_p0 = scmp.ge.s32.totalorder %s28_s20, 2  ;;  %p117_p1 = scmp.ne.s32.totalorder %s545_s14, %s541_s13 }
   0x7   : > { %p118_p2 = scmp.eq.s32.totalorder %s399_s18, 1  ;;  %p123_p3 = scmp.ne.s32.totalorder %s541_s13, %s537_s12 }
   0x8   : > { %s701_s20 = smov (%p30_p0, %s28_s20), 0  ;;  %p124_p5 = scmp.eq.s32.totalorder %s400_s19, 1 }
   0x9   : > { %p624_p4 = por %p118_p2, %p117_p1  ;;  %s102_s23 = ssub.s32 %s553_s16, %s701_s20 }
   0xa   : > { %p403_p6 = scmp.ge.s32.totalorder %s557_s17, 1  ;;  %p105_p7 = scmp.eq.s32.totalorder %s102_s23, 0 }
   0xb   : > { %p631_p8 = por %p124_p5, %p123_p3  ;;  %p161_p9 = scmp.lt.s32.totalorder %s557_s17, 3 }
   0xc   : > { %s637_s25 = scalar_select %p105_p7, %s545_s14, %s107_s21  }
   0xd   : > { %p162_p10 = pnand %p403_p6, %p161_p9 }
   0xe   : > { %p190_p11 = scmp.lt.s32.totalorder (!%p162_p10), %s549_s15, 1  ;;  %s186_s8 = sand.u32 (!%p162_p10), 1, %s541_s13  }
   0xf   : > { %165 = sbr.rel (%p162_p10) target bundleno = 245 (0xf5), region = 32  ;;  %s404_s9 = sshll.u32 (!%p162_p10), %s186_s8, 4 }
  0x10   : > { %s416_s10 = sshll.u32 (!%p162_p10), %s549_s15, 8  ;;  %s188_s11 = scalar_lea.vmem (!%p162_p10), [#allocation2], %s404_s9 }
  0x11   : > { %s323_s18 = sshll.u32 (!%p162_p10), %s188_s11, 4  ;;  %s321_s23 = scalar_lea.hbm (!%p162_p10), %s692_s3, %s416_s10  ;;  %s324_s18 = int_to_ptr.vmem [resolvable:$true] %s323_s18 }
  0x12   : > { %s307_s26 = scalar_lea.sflag (!%p162_p10), [#allocation3], %s186_s8  ;;  %s481_s27 = scalar_lea.vmem (!%p162_p10), %s324_s18, 256 }
  0x13   : > { %p482_p12 = scmp.ne.s32.totalorder (!%p162_p10), %s324_s18, %s481_s27 }
  0x14   : > { %v559_v0 = vmov 0.0   ;;  %v560_v1 = vmov 0   ;;  %v202_v2 = vld [vmem:[%s691_s2] sm:$0xff]  ;;  %s191_s28 = scalar_select %p190_p11, %s549_s15, 1  ;;  %v561_v3 = vmov 2   ;;  %vm214_vm0 = vcmask 1043456  }
  0x15   : > { %283 = vmatprep.mubr.f32.mxu0 %v559_v0  ;;  %476 = vset.pattern.permute.xlu0 %v560_v1  ;;  %v562_v5 = vmov 1   ;;  %v200_v7 = vld [vmem:[%s690_s1] sm:$0xff]  ;;  %vm210_vm1 = vcmask 31744   ;;  %p483_p13 = pnand %p482_p12, %p624_p4 }
  0x16   : > { %205 = vperm.xlu0 %476, %v202_v2   ;;  %478 = vset.pattern.permute.xlu1 %v561_v3  ;;  %s415_s29 = sshll.u32 %s191_s28, 3  ;;  %s563_s28 = smov [#allocation2]  }
  0x17   : > { %299 = vperm.xlu1 %478, %v202_v2   ;;  %s197_s5 = scalar_lea.vmem %s689_s0, %s415_s29  ;;  %p484_p0 = pneg %p483_p13 }
  0x18   : > { %v201_v4 = vld [vmem:[%s197_s5] sm:$0xff]  ;;  %s485_s15 = sshll.u32 %s563_s28, 4  ;;  %s486_s15 = int_to_ptr.vmem [resolvable:$false] %s485_s15 }
  0x19   : > { %v209_v6 = vcombine.high %v201_v4, %v201_v4  ;;  %s487_s29 = scalar_lea.vmem %s486_s15, 512  ;;  %p488_p1 = scmp.lt.s32.totalorder %s324_s18, %s486_s15 }
  0x1a   : > { %477 = vset.pattern.permute.xlu0 %v562_v5  ;;  %p489_p2 = scmp.lt.s32.totalorder %s487_s29, %s481_s27 }
  0x1b   : > { %293 = vperm.xlu0 %477, %v202_v2   ;;  %407 = vmatprep.subr.msk.mxu0 %vm214_vm0, %v209_v6 }
  0x1c   : > { %408 = vmatpush1.msk.msra.mxu0 %vm214_vm0, %v201_v4  ;;  %p490_p3 = por %p489_p2, %p488_p1 }
  0x1d   : > { %409 = vmatmul.mubr.msk.f32.vlgmr.msra.gmra.mxu0 %vm210_vm1, %v200_v7 }
  0x1e   : > { %p491_p5 = pnand %p490_p3, %p484_p0 }
  0x1f   : > { %479 = vset.pattern.permute.xlu0 %v561_v3 }
  0x91   : > { %v206_v8 = vpop.permute.xlu0 %205 }
  0x92   : > { %v300_v15 = vpop.permute.xlu1 %299 }
  0x96   : > { %v294_v12 = vpop.permute.xlu0 %293 }
  0xdd   : > { %v285_v9 = vpop.f32.mrf.mxu0 }
  0xde   : > { %v286_v10 = vadd.f32 %v285_v9, %v206_v8 }
  0xdf   : > { %v287_v11 = vpop.f32.mrf.mxu0 }
  0xe0   : > { %v290_v13 = vmax.f32 %v286_v10, 0.0  ;;  %v288_v14 = vadd.f32 %v287_v11, %v206_v8 }
  0xe2   : > { %v291_v16 = vmax.f32 %v288_v14, 0.0  ;;  %v296_v17 = vmul.f32 %v294_v12, %v290_v13 }
  0xe4   : > { %v297_v18 = vmul.f32 %v294_v12, %v291_v16  ;;  %v302_v19 = vadd.f32 %v300_v15, %v296_v17 }
  0xe6   : > { %v303_v20 = vadd.f32 %v300_v15, %v297_v18  ;;  %304 = vst [vmem:[%s188_s11] sm:$0xff] %v302_v19 }
  0xe8   : > { %305 = vst [vmem:[%s188_s11 + $0x8] sm:$0xff] %v303_v20 }
  0xe9   : > { %494 = shalt.err (!%p491_p5)
}
  0xea   : > { %s495_s30 = scalar_lea.hbm %s321_s23, 256  ;;  %s499_s6 = scalar_lea.hbm %s692_s3, 512 }
  0xeb   : > { %p496_p6 = scmp.ne.s32.totalorder %s321_s23, %s495_s30  ;;  %p500_p10 = scmp.lt.s32.totalorder %s321_s23, %s692_s3 }
  0xec   : > { %p501_p11 = scmp.lt.s32.totalorder %s499_s6, %s495_s30 }
  0xed   : > { %p497_p7 = pnand %p496_p6, %p624_p4 }
  0xee   : > { %p502_p12 = por %p501_p11, %p500_p10 }
  0xef   : > { %p498_p9 = pneg %p497_p7 }
  0xf1   : > { %p503_p13 = pnand %p502_p12, %p498_p9 }
  0xf3   : > { %506 = shalt.err (!%p503_p13)
}
  0xf4   : > { %417 = dma.vmem_to_hbm [thread:$0]  (%p624_p4), %s324_s18, 256, %s321_s23, %s307_s26  }
  0xf5 PF: > { %p423_p0 = scmp.ge.s32.totalorder %s557_s17, 2  ;;  %s335_s9 = sand.u32 1, %s537_s12  }
  0xf6   : > { %s336_s10 = scalar_lea.sflag [#allocation3], %s335_s9 }
  0xf7   : > { %p420_p1 = pnand %p423_p0, %p631_p8 }
  0xf9   : > { %p421_p2 = pneg %p420_p1 }
  0xfb   : > { %532 = dma.done.wait (%p421_p2), %s336_s10, 256  }
  0xfc   : > { %534 = vsyncadd (%p421_p2), %s336_s10, 4294967040  ;;  %s16_s17 = sadd.s32 1, %s557_s17   ;;  %s695_s12 = smov %s541_s13 }
  0xfd   : > { %p13_p3 = scmp.ge.s32.totalorder %s16_s17, 4   ;;  %s696_s13 = smov %s545_s14 }
  0xfe   : > { %s697_s14 = smov %s637_s25  ;;  %s698_s15 = smov %s553_s16 }
  0xff   : > { %s699_s16 = smov %s701_s20  ;;  %15 = sbr.rel (!%p13_p3) target bundleno = 4 (0x4), region = 67 }
 0x104   :  { %341 = vsyncpa [#allocation3], 1 }
 0x105   :  { %343 = vsyncpa [#allocation3 + $0x1], 1 }

</bundles_post_ra>
